<compile_context>
chip_gen: v5e
topology: v5e:2x2
jax: 0.10.0
libtpu: 0.0.40
codegen_flags: <defaults>
</compile_context>

<pallas_src>
import functools

import jax
import jax.numpy as jnp
import numpy as np
from jax.experimental import pallas as pl
from jax.experimental.pallas import tpu as pltpu


def _conv3(h, w_ref, b_ref, not_first, not_last, compute_dtype):
    """Conv1d(k=3, padding=1) in channels-last (L, C) layout.

    h: (L, C) f32.  w_ref: (3, C, C) taps ordered [l-1, l, l+1].  b_ref: (1, C) f32.
    not_first / not_last: (L, C) bool masks zeroing the wrapped edge row after roll.
    """
    L = h.shape[0]
    left = jnp.where(not_first, pltpu.roll(h, shift=1, axis=0), 0.0)       # h[l-1]
    right = jnp.where(not_last, pltpu.roll(h, shift=L - 1, axis=0), 0.0)   # h[l+1]
    y = jnp.dot(left.astype(compute_dtype), w_ref[0],
                preferred_element_type=jnp.float32)
    y = y + jnp.dot(h.astype(compute_dtype), w_ref[1],
                    preferred_element_type=jnp.float32)
    y = y + jnp.dot(right.astype(compute_dtype), w_ref[2],
                    preferred_element_type=jnp.float32)
    return y + b_ref[...]


def _conv_pool_kernel(xcols_ref, w0_ref, b0_ref,
                      wr1_ref, br1_ref, wr2_ref, br2_ref,
                      w3_ref, b3_ref, pooled_ref, *, compute_dtype):
    """One batch element per grid step: conv stack + mean over length."""
    xcols = xcols_ref[0]                       # (L, 3) f32: [x[l-1], x[l], x[l+1]]
    L = xcols.shape[0]
    C = w0_ref.shape[1]

    xl = xcols[:, 0:1]                         # (L, 1)
    xc = xcols[:, 1:2]
    xr = xcols[:, 2:3]

    # conv_block[0]: Conv1d(1 -> C, k=3, pad=1) + ReLU.  Cin=1, so compute it on
    # the VPU via per-channel broadcasts instead of a K=3 MXU matmul.
    h0 = xl * w0_ref[0:1, :] + xc * w0_ref[1:2, :] + xr * w0_ref[2:3, :] + b0_ref[...]
    h0 = jnp.maximum(h0, 0.0)                  # (L, C) f32

    # Edge masks for the k=3 convs (rolled rows wrap; zero the single edge row).
    row = jax.lax.broadcasted_iota(jnp.int32, (L, C), 0)
    not_first = row != 0
    not_last = row != (L - 1)

    # ResidualConvBlock(C, C): relu(conv(relu(conv(h0))) + h0)   (identity shortcut)
    r = jnp.maximum(_conv3(h0, wr1_ref, br1_ref, not_first, not_last, compute_dtype), 0.0)
    r = _conv3(r, wr2_ref, br2_ref, not_first, not_last, compute_dtype)
    h1 = jnp.maximum(r + h0, 0.0)

    # conv_block[3]: Conv1d(C -> C, k=3, pad=1) (no activation)
    h2 = _conv3(h1, w3_ref, b3_ref, not_first, not_last, compute_dtype)

    # Residual with the 1-channel input (broadcast over channels), then mean over L.
    cf = h2 + xc                               # (L, C) f32
    pooled_ref[0] = jnp.sum(cf, axis=0, keepdims=True) * (1.0 / L)   # (1, C)


def _head_kernel(pooled_ref, fw1_ref, fb1_ref, fw2_ref, fb2_ref,
                 fw3_ref, fb3_ref, fw4_ref, fb4_ref, out_ref):
    """fc_layers + sigmoid on the pooled (B, C) features (tiny, f32)."""
    z = pooled_ref[...]
    z = jnp.maximum(jnp.dot(z, fw1_ref[...], preferred_element_type=jnp.float32)
                    + fb1_ref[...], 0.0)
    z = jnp.maximum(jnp.dot(z, fw2_ref[...], preferred_element_type=jnp.float32)
                    + fb2_ref[...], 0.0)
    z = jnp.maximum(jnp.dot(z, fw3_ref[...], preferred_element_type=jnp.float32)
                    + fb3_ref[...], 0.0)
    z = jnp.dot(z, fw4_ref[...], preferred_element_type=jnp.float32) + fb4_ref[...]
    out_ref[...] = 1.0 / (1.0 + jnp.exp(-z))   # sigmoid, (B, 1)


def mlp_forward(x, p, compute_dtype=jnp.bfloat16):
    """x: (B, L) f32 (PyTorch 2-D input path).  Returns (B, 1) f32."""
    B, L = x.shape
    C = p["w0"].shape[0]
    x = x.astype(jnp.float32)

    # Shifted input columns [x[l-1], x[l], x[l+1]] (zero padded at segment edges).
    xl = jnp.pad(x, ((0, 0), (1, 0)))[:, :L]
    xr = jnp.pad(x, ((0, 0), (0, 1)))[:, 1:]
    xcols = jnp.stack([xl, x, xr], axis=-1)                # (B, L, 3)

    def conv_w(w):   # (Cout, Cin, 3) -> (3, Cin, Cout)
        return jnp.transpose(w, (2, 1, 0))

    def fc_w(w):     # (out, in) -> (in, out)
        return jnp.transpose(w).astype(jnp.float32)

    def rowv(b):
        return b.reshape(1, -1).astype(jnp.float32)

    conv_args = (
        xcols,
        # first conv runs on the VPU -> keep its weight/bias in f32
        conv_w(p["w0"]).reshape(3, C).astype(jnp.float32), rowv(p["b0"]),
        # C x C conv weights in compute_dtype (bf16) for the MXU, biases f32
        conv_w(p["wr1"]).astype(compute_dtype), rowv(p["br1"]),
        conv_w(p["wr2"]).astype(compute_dtype), rowv(p["br2"]),
        conv_w(p["w3"]).astype(compute_dtype), rowv(p["b3"]),
    )

    resident2 = lambda i: (0, 0)        # weights stay VMEM-resident across the grid
    resident3 = lambda i: (0, 0, 0)
    conv_in_specs = [
        pl.BlockSpec((1, L, 3), lambda i: (i, 0, 0)),      # per-batch input block
        pl.BlockSpec((3, C), resident2), pl.BlockSpec((1, C), resident2),
        pl.BlockSpec((3, C, C), resident3), pl.BlockSpec((1, C), resident2),
        pl.BlockSpec((3, C, C), resident3), pl.BlockSpec((1, C), resident2),
        pl.BlockSpec((3, C, C), resident3), pl.BlockSpec((1, C), resident2),
    ]

    pooled = pl.pallas_call(
        functools.partial(_conv_pool_kernel, compute_dtype=compute_dtype),
        out_shape=jax.ShapeDtypeStruct((B, 1, C), jnp.float32),
        grid=(B,),
        in_specs=conv_in_specs,
        out_specs=pl.BlockSpec((1, 1, C), lambda i: (i, 0, 0)),
        compiler_params=pltpu.CompilerParams(
            dimension_semantics=("parallel",),             # shard batch over TCs (v7x)
            vmem_limit_bytes=32 * 1024 * 1024),
    )(*conv_args)

    head_args = (
        pooled.reshape(B, C),
        fc_w(p["fw1"]), rowv(p["fb1"]),
        fc_w(p["fw2"]), rowv(p["fb2"]),
        fc_w(p["fw3"]), rowv(p["fb3"]),
        fc_w(p["fw4"]), rowv(p["fb4"]),
    )
    vmem = pl.BlockSpec(memory_space=pltpu.MemorySpace.VMEM)
    return pl.pallas_call(
        _head_kernel,
        out_shape=jax.ShapeDtypeStruct((B, 1), jnp.float32),
        in_specs=[vmem] * len(head_args),
        out_specs=vmem,
    )(*head_args)


def init_params(key, input_size):
    """Deterministic init matching MLP._init_weights shapes/semantics."""
    C = input_size
    ks = jax.random.split(key, 12)

    def kaiming(k, shape):             # Conv1d weight (Cout, Cin, K), fan_out = Cout*K
        fan_out = shape[0] * shape[2]
        return jax.random.normal(k, shape, jnp.float32) * np.sqrt(2.0 / fan_out)

    def conv_bias(k, cout, cin, ksz):  # PyTorch default Conv1d bias init
        bound = 1.0 / np.sqrt(cin * ksz)
        return jax.random.uniform(k, (cout,), jnp.float32, -bound, bound)

    std = 1.0 / (C + 1)

    def fc(k, out_d, in_d):
        return jax.random.normal(k, (out_d, in_d), jnp.float32) * std

    return dict(
        w0=kaiming(ks[0], (C, 1, 3)), b0=conv_bias(ks[1], C, 1, 3),
        wr1=kaiming(ks[2], (C, C, 3)), br1=conv_bias(ks[3], C, C, 3),
        wr2=kaiming(ks[4], (C, C, 3)), br2=conv_bias(ks[5], C, C, 3),
        w3=kaiming(ks[6], (C, C, 3)), b3=conv_bias(ks[7], C, C, 3),
        fw1=fc(ks[8], 256, C), fb1=jnp.zeros((256,), jnp.float32),
        fw2=fc(ks[9], 128, 256), fb2=jnp.zeros((128,), jnp.float32),
        fw3=fc(ks[10], 64, 128), fb3=jnp.zeros((64,), jnp.float32),
        fw4=fc(ks[11], 1, 64), fb4=jnp.zeros((1,), jnp.float32),
    )


def mlp_reference(x, p):
    """Pure-JAX reference mirroring the PyTorch forward (for correctness check)."""
    def conv1d(h, w, b):
        y = jax.lax.conv_general_dilated(
            h, w, window_strides=(1,), padding=((1, 1),),
            dimension_numbers=("NCH", "OIH", "NCH"))
        return y + b[None, :, None]

    x3 = x[:, None, :]                                    # (B, 1, L)
    h0 = jax.nn.relu(conv1d(x3, p["w0"], p["b0"]))
    r = conv1d(jax.nn.relu(conv1d(h0, p["wr1"], p["br1"])), p["wr2"], p["br2"])
    h1 = jax.nn.relu(r + h0)
    h2 = conv1d(h1, p["w3"], p["b3"])
    cf = (h2 + x3).mean(axis=2)                           # (B, C)
    z = jax.nn.relu(cf @ p["fw1"].T + p["fb1"])
    z = jax.nn.relu(z @ p["fw2"].T + p["fb2"])
    z = jax.nn.relu(z @ p["fw3"].T + p["fb3"])
    z = z @ p["fw4"].T + p["fb4"]
    return jax.nn.sigmoid(z)


if __name__ == "__main__":
    # Small version of x = randn(32, 512), input_size=512.  L and C multiples of 8.
    B, L, INPUT_SIZE = 4, 16, 32
    key = jax.random.PRNGKey(0)
    kx, kp = jax.random.split(key)
    x = jax.random.normal(kx, (B, L), jnp.float32)
    params = init_params(kp, INPUT_SIZE)

    ref = jax.block_until_ready(mlp_reference(x, params))

    # f32 path: tight check of the kernel semantics.
    out_f32 = jax.block_until_ready(mlp_forward(x, params, compute_dtype=jnp.float32))
    assert out_f32.shape == (B, 1)
    np.testing.assert_allclose(np.asarray(out_f32), np.asarray(ref), rtol=1e-4, atol=1e-4)

    # bf16 matmul path (the performance configuration): looser tolerance.
    out_bf16 = jax.block_until_ready(mlp_forward(x, params, compute_dtype=jnp.bfloat16))
    assert out_bf16.shape == (B, 1)
    np.testing.assert_allclose(np.asarray(out_bf16), np.asarray(ref), rtol=5e-2, atol=5e-2)

    print("KERNEL_OK")
</pallas_src>

<mosaic_0001>
module attributes {stable_mosaic.version = 11 : i64} {
  func.func @_conv_pool_kernel(%arg0: i32, %arg1: memref<1x16x3xf32, #tpu.memory_space<vmem>>, %arg2: memref<3x32xf32, #tpu.memory_space<vmem>>, %arg3: memref<1x32xf32, #tpu.memory_space<vmem>>, %arg4: memref<3x32x32xf32, #tpu.memory_space<vmem>>, %arg5: memref<1x32xf32, #tpu.memory_space<vmem>>, %arg6: memref<3x32x32xf32, #tpu.memory_space<vmem>>, %arg7: memref<1x32xf32, #tpu.memory_space<vmem>>, %arg8: memref<3x32x32xf32, #tpu.memory_space<vmem>>, %arg9: memref<1x32xf32, #tpu.memory_space<vmem>>, %arg10: memref<1x1x32xf32, #tpu.memory_space<vmem>>) attributes {dimension_semantics = [#tpu.dimension_semantics<parallel>], iteration_bounds = array<i64: 4>, scalar_prefetch = 0 : i64, scratch_operands = 0 : i64, tpu.core_type = #tpu.core_type<tc>, window_params = [{transform_indices = @transform_0, window_bounds = array<i64: 1, 16, 3>}, {pipeline_mode = #tpu.pipeline_mode<synchronous>, transform_indices = @transform_1, window_bounds = array<i64: 3, 32>}, {pipeline_mode = #tpu.pipeline_mode<synchronous>, transform_indices = @transform_2, window_bounds = array<i64: 1, 32>}, {pipeline_mode = #tpu.pipeline_mode<synchronous>, transform_indices = @transform_3, window_bounds = array<i64: 3, 32, 32>}, {pipeline_mode = #tpu.pipeline_mode<synchronous>, transform_indices = @transform_4, window_bounds = array<i64: 1, 32>}, {pipeline_mode = #tpu.pipeline_mode<synchronous>, transform_indices = @transform_5, window_bounds = array<i64: 3, 32, 32>}, {pipeline_mode = #tpu.pipeline_mode<synchronous>, transform_indices = @transform_6, window_bounds = array<i64: 1, 32>}, {pipeline_mode = #tpu.pipeline_mode<synchronous>, transform_indices = @transform_7, window_bounds = array<i64: 3, 32, 32>}, {pipeline_mode = #tpu.pipeline_mode<synchronous>, transform_indices = @transform_8, window_bounds = array<i64: 1, 32>}, {transform_indices = @transform_9, window_bounds = array<i64: 1, 1, 32>}]} {
    %c0 = arith.constant 0 : index
    %c0_0 = arith.constant 0 : index
    %c0_1 = arith.constant 0 : index
    %0 = vector.load %arg1[%c0, %c0_0, %c0_1] : memref<1x16x3xf32, #tpu.memory_space<vmem>>, vector<1x16x3xf32>
    %1 = vector.shape_cast %0 : vector<1x16x3xf32> to vector<16x3xf32>
    %2 = vector.extract_strided_slice %1 {offsets = [0, 0], sizes = [16, 1], strides = [1, 1]} : vector<16x3xf32> to vector<16x1xf32>
    %3 = vector.extract_strided_slice %1 {offsets = [0, 1], sizes = [16, 1], strides = [1, 1]} : vector<16x3xf32> to vector<16x1xf32>
    %4 = vector.extract_strided_slice %1 {offsets = [0, 2], sizes = [16, 1], strides = [1, 1]} : vector<16x3xf32> to vector<16x1xf32>
    %c0_2 = arith.constant 0 : index
    %c0_3 = arith.constant 0 : index
    %5 = vector.load %arg2[%c0_2, %c0_3] : memref<3x32xf32, #tpu.memory_space<vmem>>, vector<1x32xf32>
    %6 = vector.broadcast %2 : vector<16x1xf32> to vector<16x32xf32>
    %7 = vector.broadcast %5 : vector<1x32xf32> to vector<16x32xf32>
    %8 = arith.mulf %6, %7 : vector<16x32xf32>
    %c1 = arith.constant 1 : index
    %c0_4 = arith.constant 0 : index
    %9 = vector.load %arg2[%c1, %c0_4] : memref<3x32xf32, #tpu.memory_space<vmem>>, vector<1x32xf32>
    %10 = vector.broadcast %3 : vector<16x1xf32> to vector<16x32xf32>
    %11 = vector.broadcast %9 : vector<1x32xf32> to vector<16x32xf32>
    %12 = arith.mulf %10, %11 : vector<16x32xf32>
    %13 = arith.addf %8, %12 : vector<16x32xf32>
    %c2 = arith.constant 2 : index
    %c0_5 = arith.constant 0 : index
    %14 = vector.load %arg2[%c2, %c0_5] : memref<3x32xf32, #tpu.memory_space<vmem>>, vector<1x32xf32>
    %15 = vector.broadcast %4 : vector<16x1xf32> to vector<16x32xf32>
    %16 = vector.broadcast %14 : vector<1x32xf32> to vector<16x32xf32>
    %17 = arith.mulf %15, %16 : vector<16x32xf32>
    %18 = arith.addf %13, %17 : vector<16x32xf32>
    %c0_6 = arith.constant 0 : index
    %c0_7 = arith.constant 0 : index
    %19 = vector.load %arg3[%c0_6, %c0_7] : memref<1x32xf32, #tpu.memory_space<vmem>>, vector<1x32xf32>
    %20 = vector.broadcast %19 : vector<1x32xf32> to vector<16x32xf32>
    %21 = arith.addf %18, %20 : vector<16x32xf32>
    %cst = arith.constant 0.000000e+00 : f32
    %22 = vector.broadcast %cst : f32 to vector<16x32xf32>
    %23 = arith.maximumf %21, %22 : vector<16x32xf32>
    %24 = tpu.iota {dimensions = array<i32: 0>} : vector<16x32xi32>
    %c0_i32 = arith.constant 0 : i32
    %25 = vector.broadcast %c0_i32 : i32 to vector<16x32xi32>
    %26 = arith.cmpi ne, %24, %25 : vector<16x32xi32>
    %c15_i32 = arith.constant 15 : i32
    %27 = vector.broadcast %c15_i32 : i32 to vector<16x32xi32>
    %28 = arith.cmpi ne, %24, %27 : vector<16x32xi32>
    %c1_i32 = arith.constant 1 : i32
    %29 = tpu.dynamic_rotate %23 by %c1_i32 dim 0 : vector<16x32xf32>, i32 -> vector<16x32xf32>
    %cst_8 = arith.constant 0.000000e+00 : f32
    %30 = vector.broadcast %cst_8 : f32 to vector<16x32xf32>
    %31 = arith.select %26, %29, %30 : vector<16x32xi1>, vector<16x32xf32>
    %c15_i32_9 = arith.constant 15 : i32
    %32 = tpu.dynamic_rotate %23 by %c15_i32_9 dim 0 : vector<16x32xf32>, i32 -> vector<16x32xf32>
    %cst_10 = arith.constant 0.000000e+00 : f32
    %33 = vector.broadcast %cst_10 : f32 to vector<16x32xf32>
    %34 = arith.select %28, %32, %33 : vector<16x32xi1>, vector<16x32xf32>
    %c0_11 = arith.constant 0 : index
    %c0_12 = arith.constant 0 : index
    %c0_13 = arith.constant 0 : index
    %35 = vector.load %arg4[%c0_11, %c0_12, %c0_13] : memref<3x32x32xf32, #tpu.memory_space<vmem>>, vector<1x32x32xf32>
    %36 = vector.shape_cast %35 : vector<1x32x32xf32> to vector<32x32xf32>
    %cst_14 = arith.constant dense<0.000000e+00> : vector<16x32xf32>
    %37 = tpu.matmul %31, %36, %cst_14 {dimension_numbers = #tpu.dot_dimension_numbers<[1], [0], [0], [1], [0, 0, 1, 1], [], []>} : vector<16x32xf32>, vector<32x32xf32>, vector<16x32xf32> -> vector<16x32xf32>
    %c1_15 = arith.constant 1 : index
    %c0_16 = arith.constant 0 : index
    %c0_17 = arith.constant 0 : index
    %38 = vector.load %arg4[%c1_15, %c0_16, %c0_17] : memref<3x32x32xf32, #tpu.memory_space<vmem>>, vector<1x32x32xf32>
    %39 = vector.shape_cast %38 : vector<1x32x32xf32> to vector<32x32xf32>
    %cst_18 = arith.constant dense<0.000000e+00> : vector<16x32xf32>
    %40 = tpu.matmul %23, %39, %cst_18 {dimension_numbers = #tpu.dot_dimension_numbers<[1], [0], [0], [1], [0, 0, 1, 1], [], []>} : vector<16x32xf32>, vector<32x32xf32>, vector<16x32xf32> -> vector<16x32xf32>
    %41 = arith.addf %37, %40 : vector<16x32xf32>
    %c2_19 = arith.constant 2 : index
    %c0_20 = arith.constant 0 : index
    %c0_21 = arith.constant 0 : index
    %42 = vector.load %arg4[%c2_19, %c0_20, %c0_21] : memref<3x32x32xf32, #tpu.memory_space<vmem>>, vector<1x32x32xf32>
    %43 = vector.shape_cast %42 : vector<1x32x32xf32> to vector<32x32xf32>
    %cst_22 = arith.constant dense<0.000000e+00> : vector<16x32xf32>
    %44 = tpu.matmul %34, %43, %cst_22 {dimension_numbers = #tpu.dot_dimension_numbers<[1], [0], [0], [1], [0, 0, 1, 1], [], []>} : vector<16x32xf32>, vector<32x32xf32>, vector<16x32xf32> -> vector<16x32xf32>
    %45 = arith.addf %41, %44 : vector<16x32xf32>
    %c0_23 = arith.constant 0 : index
    %c0_24 = arith.constant 0 : index
    %46 = vector.load %arg5[%c0_23, %c0_24] : memref<1x32xf32, #tpu.memory_space<vmem>>, vector<1x32xf32>
    %47 = vector.broadcast %46 : vector<1x32xf32> to vector<16x32xf32>
    %48 = arith.addf %45, %47 : vector<16x32xf32>
    %cst_25 = arith.constant 0.000000e+00 : f32
    %49 = vector.broadcast %cst_25 : f32 to vector<16x32xf32>
    %50 = arith.maximumf %48, %49 : vector<16x32xf32>
    %c1_i32_26 = arith.constant 1 : i32
    %51 = tpu.dynamic_rotate %50 by %c1_i32_26 dim 0 : vector<16x32xf32>, i32 -> vector<16x32xf32>
    %cst_27 = arith.constant 0.000000e+00 : f32
    %52 = vector.broadcast %cst_27 : f32 to vector<16x32xf32>
    %53 = arith.select %26, %51, %52 : vector<16x32xi1>, vector<16x32xf32>
    %c15_i32_28 = arith.constant 15 : i32
    %54 = tpu.dynamic_rotate %50 by %c15_i32_28 dim 0 : vector<16x32xf32>, i32 -> vector<16x32xf32>
    %cst_29 = arith.constant 0.000000e+00 : f32
    %55 = vector.broadcast %cst_29 : f32 to vector<16x32xf32>
    %56 = arith.select %28, %54, %55 : vector<16x32xi1>, vector<16x32xf32>
    %c0_30 = arith.constant 0 : index
    %c0_31 = arith.constant 0 : index
    %c0_32 = arith.constant 0 : index
    %57 = vector.load %arg6[%c0_30, %c0_31, %c0_32] : memref<3x32x32xf32, #tpu.memory_space<vmem>>, vector<1x32x32xf32>
    %58 = vector.shape_cast %57 : vector<1x32x32xf32> to vector<32x32xf32>
    %cst_33 = arith.constant dense<0.000000e+00> : vector<16x32xf32>
    %59 = tpu.matmul %53, %58, %cst_33 {dimension_numbers = #tpu.dot_dimension_numbers<[1], [0], [0], [1], [0, 0, 1, 1], [], []>} : vector<16x32xf32>, vector<32x32xf32>, vector<16x32xf32> -> vector<16x32xf32>
    %c1_34 = arith.constant 1 : index
    %c0_35 = arith.constant 0 : index
    %c0_36 = arith.constant 0 : index
    %60 = vector.load %arg6[%c1_34, %c0_35, %c0_36] : memref<3x32x32xf32, #tpu.memory_space<vmem>>, vector<1x32x32xf32>
    %61 = vector.shape_cast %60 : vector<1x32x32xf32> to vector<32x32xf32>
    %cst_37 = arith.constant dense<0.000000e+00> : vector<16x32xf32>
    %62 = tpu.matmul %50, %61, %cst_37 {dimension_numbers = #tpu.dot_dimension_numbers<[1], [0], [0], [1], [0, 0, 1, 1], [], []>} : vector<16x32xf32>, vector<32x32xf32>, vector<16x32xf32> -> vector<16x32xf32>
    %63 = arith.addf %59, %62 : vector<16x32xf32>
    %c2_38 = arith.constant 2 : index
    %c0_39 = arith.constant 0 : index
    %c0_40 = arith.constant 0 : index
    %64 = vector.load %arg6[%c2_38, %c0_39, %c0_40] : memref<3x32x32xf32, #tpu.memory_space<vmem>>, vector<1x32x32xf32>
    %65 = vector.shape_cast %64 : vector<1x32x32xf32> to vector<32x32xf32>
    %cst_41 = arith.constant dense<0.000000e+00> : vector<16x32xf32>
    %66 = tpu.matmul %56, %65, %cst_41 {dimension_numbers = #tpu.dot_dimension_numbers<[1], [0], [0], [1], [0, 0, 1, 1], [], []>} : vector<16x32xf32>, vector<32x32xf32>, vector<16x32xf32> -> vector<16x32xf32>
    %67 = arith.addf %63, %66 : vector<16x32xf32>
    %c0_42 = arith.constant 0 : index
    %c0_43 = arith.constant 0 : index
    %68 = vector.load %arg7[%c0_42, %c0_43] : memref<1x32xf32, #tpu.memory_space<vmem>>, vector<1x32xf32>
    %69 = vector.broadcast %68 : vector<1x32xf32> to vector<16x32xf32>
    %70 = arith.addf %67, %69 : vector<16x32xf32>
    %71 = arith.addf %70, %23 : vector<16x32xf32>
    %cst_44 = arith.constant 0.000000e+00 : f32
    %72 = vector.broadcast %cst_44 : f32 to vector<16x32xf32>
    %73 = arith.maximumf %71, %72 : vector<16x32xf32>
    %c1_i32_45 = arith.constant 1 : i32
    %74 = tpu.dynamic_rotate %73 by %c1_i32_45 dim 0 : vector<16x32xf32>, i32 -> vector<16x32xf32>
    %cst_46 = arith.constant 0.000000e+00 : f32
    %75 = vector.broadcast %cst_46 : f32 to vector<16x32xf32>
    %76 = arith.select %26, %74, %75 : vector<16x32xi1>, vector<16x32xf32>
    %c15_i32_47 = arith.constant 15 : i32
    %77 = tpu.dynamic_rotate %73 by %c15_i32_47 dim 0 : vector<16x32xf32>, i32 -> vector<16x32xf32>
    %cst_48 = arith.constant 0.000000e+00 : f32
    %78 = vector.broadcast %cst_48 : f32 to vector<16x32xf32>
    %79 = arith.select %28, %77, %78 : vector<16x32xi1>, vector<16x32xf32>
    %c0_49 = arith.constant 0 : index
    %c0_50 = arith.constant 0 : index
    %c0_51 = arith.constant 0 : index
    %80 = vector.load %arg8[%c0_49, %c0_50, %c0_51] : memref<3x32x32xf32, #tpu.memory_space<vmem>>, vector<1x32x32xf32>
    %81 = vector.shape_cast %80 : vector<1x32x32xf32> to vector<32x32xf32>
    %cst_52 = arith.constant dense<0.000000e+00> : vector<16x32xf32>
    %82 = tpu.matmul %76, %81, %cst_52 {dimension_numbers = #tpu.dot_dimension_numbers<[1], [0], [0], [1], [0, 0, 1, 1], [], []>} : vector<16x32xf32>, vector<32x32xf32>, vector<16x32xf32> -> vector<16x32xf32>
    %c1_53 = arith.constant 1 : index
    %c0_54 = arith.constant 0 : index
    %c0_55 = arith.constant 0 : index
    %83 = vector.load %arg8[%c1_53, %c0_54, %c0_55] : memref<3x32x32xf32, #tpu.memory_space<vmem>>, vector<1x32x32xf32>
    %84 = vector.shape_cast %83 : vector<1x32x32xf32> to vector<32x32xf32>
    %cst_56 = arith.constant dense<0.000000e+00> : vector<16x32xf32>
    %85 = tpu.matmul %73, %84, %cst_56 {dimension_numbers = #tpu.dot_dimension_numbers<[1], [0], [0], [1], [0, 0, 1, 1], [], []>} : vector<16x32xf32>, vector<32x32xf32>, vector<16x32xf32> -> vector<16x32xf32>
    %86 = arith.addf %82, %85 : vector<16x32xf32>
    %c2_57 = arith.constant 2 : index
    %c0_58 = arith.constant 0 : index
    %c0_59 = arith.constant 0 : index
    %87 = vector.load %arg8[%c2_57, %c0_58, %c0_59] : memref<3x32x32xf32, #tpu.memory_space<vmem>>, vector<1x32x32xf32>
    %88 = vector.shape_cast %87 : vector<1x32x32xf32> to vector<32x32xf32>
    %cst_60 = arith.constant dense<0.000000e+00> : vector<16x32xf32>
    %89 = tpu.matmul %79, %88, %cst_60 {dimension_numbers = #tpu.dot_dimension_numbers<[1], [0], [0], [1], [0, 0, 1, 1], [], []>} : vector<16x32xf32>, vector<32x32xf32>, vector<16x32xf32> -> vector<16x32xf32>
    %90 = arith.addf %86, %89 : vector<16x32xf32>
    %c0_61 = arith.constant 0 : index
    %c0_62 = arith.constant 0 : index
    %91 = vector.load %arg9[%c0_61, %c0_62] : memref<1x32xf32, #tpu.memory_space<vmem>>, vector<1x32xf32>
    %92 = vector.broadcast %91 : vector<1x32xf32> to vector<16x32xf32>
    %93 = arith.addf %90, %92 : vector<16x32xf32>
    %94 = vector.broadcast %3 : vector<16x1xf32> to vector<16x32xf32>
    %95 = arith.addf %93, %94 : vector<16x32xf32>
    %cst_63 = arith.constant dense<0.000000e+00> : vector<32xf32>
    %96 = vector.multi_reduction <add>, %95, %cst_63 [0] : vector<16x32xf32> to vector<32xf32>
    %97 = vector.shape_cast %96 : vector<32xf32> to vector<1x32xf32>
    %cst_64 = arith.constant 6.250000e-02 : f32
    %98 = vector.broadcast %cst_64 : f32 to vector<1x32xf32>
    %99 = arith.mulf %97, %98 : vector<1x32xf32>
    %c0_65 = arith.constant 0 : index
    %c0_66 = arith.constant 0 : index
    %c0_67 = arith.constant 0 : index
    %100 = vector.load %arg10[%c0_65, %c0_66, %c0_67] : memref<1x1x32xf32, #tpu.memory_space<vmem>>, vector<1x1x32xf32>
    %101 = vector.shape_cast %100 : vector<1x1x32xf32> to vector<1x32xf32>
    %102 = vector.shape_cast %99 : vector<1x32xf32> to vector<1x1x32xf32>
    tpu.vector_store %arg10[%c0_65, %c0_66, %c0_67], %102 {strides = array<i32>} : memref<1x1x32xf32, #tpu.memory_space<vmem>>, vector<1x1x32xf32>,
    return
  }
  func.func @transform_0(%arg0: i32) -> (i32, i32, i32) {
    %c0_i32 = arith.constant 0 : i32
    %c0_i32_0 = arith.constant 0 : i32
    %c0_i32_1 = arith.constant 0 : i32
    return %arg0, %c0_i32, %c0_i32_0 : i32, i32, i32
  }
  func.func @transform_1(%arg0: i32) -> (i32, i32) {
    %c0_i32 = arith.constant 0 : i32
    %c0_i32_0 = arith.constant 0 : i32
    %c0_i32_1 = arith.constant 0 : i32
    return %c0_i32, %c0_i32_0 : i32, i32
  }
  func.func @transform_2(%arg0: i32) -> (i32, i32) {
    %c0_i32 = arith.constant 0 : i32
    %c0_i32_0 = arith.constant 0 : i32
    %c0_i32_1 = arith.constant 0 : i32
    return %c0_i32, %c0_i32_0 : i32, i32
  }
  func.func @transform_3(%arg0: i32) -> (i32, i32, i32) {
    %c0_i32 = arith.constant 0 : i32
    %c0_i32_0 = arith.constant 0 : i32
    %c0_i32_1 = arith.constant 0 : i32
    %c0_i32_2 = arith.constant 0 : i32
    return %c0_i32, %c0_i32_0, %c0_i32_1 : i32, i32, i32
  }
  func.func @transform_4(%arg0: i32) -> (i32, i32) {
    %c0_i32 = arith.constant 0 : i32
    %c0_i32_0 = arith.constant 0 : i32
    %c0_i32_1 = arith.constant 0 : i32
    return %c0_i32, %c0_i32_0 : i32, i32
  }
  func.func @transform_5(%arg0: i32) -> (i32, i32, i32) {
    %c0_i32 = arith.constant 0 : i32
    %c0_i32_0 = arith.constant 0 : i32
    %c0_i32_1 = arith.constant 0 : i32
    %c0_i32_2 = arith.constant 0 : i32
    return %c0_i32, %c0_i32_0, %c0_i32_1 : i32, i32, i32
  }
  func.func @transform_6(%arg0: i32) -> (i32, i32) {
    %c0_i32 = arith.constant 0 : i32
    %c0_i32_0 = arith.constant 0 : i32
    %c0_i32_1 = arith.constant 0 : i32
    return %c0_i32, %c0_i32_0 : i32, i32
  }
  func.func @transform_7(%arg0: i32) -> (i32, i32, i32) {
    %c0_i32 = arith.constant 0 : i32
    %c0_i32_0 = arith.constant 0 : i32
    %c0_i32_1 = arith.constant 0 : i32
    %c0_i32_2 = arith.constant 0 : i32
    return %c0_i32, %c0_i32_0, %c0_i32_1 : i32, i32, i32
  }
  func.func @transform_8(%arg0: i32) -> (i32, i32) {
    %c0_i32 = arith.constant 0 : i32
    %c0_i32_0 = arith.constant 0 : i32
    %c0_i32_1 = arith.constant 0 : i32
    return %c0_i32, %c0_i32_0 : i32, i32
  }
  func.func @transform_9(%arg0: i32) -> (i32, i32, i32) {
    %c0_i32 = arith.constant 0 : i32
    %c0_i32_0 = arith.constant 0 : i32
    %c0_i32_1 = arith.constant 0 : i32
    return %arg0, %c0_i32, %c0_i32_0 : i32, i32, i32
  }
}

</mosaic_0001>

<bundles_post_ra>
// kernel: tpu_custom_call.1
= control target key start
LH: loop header
LB: loop body
LE: loop exit
PB: predicated region body
PF: predicated region fallthrough
CT: control target
= control target key end

     0   :  { %s1498_s0 = inlined_call_operand.vmem [shape: f32[4,16,3], index: 0, kind: input, shape index: {}]   ;;  %s1499_s1 = inlined_call_operand.vmem [shape: f32[3,32], index: 1, kind: input, shape index: {}]   ;;  %s1500_s2 = inlined_call_operand.vmem [shape: f32[1,32], index: 2, kind: input, shape index: {}]   ;;  %s1501_s3 = inlined_call_operand.hbm [shape: f32[3,32,32], index: 3, kind: input, shape index: {}]   ;;  %s1502_s4 = inlined_call_operand.vmem [shape: f32[1,32], index: 4, kind: input, shape index: {}]   ;;  %s1503_s5 = inlined_call_operand.hbm [shape: f32[3,32,32], index: 5, kind: input, shape index: {}]   ;;  %s1504_s6 = inlined_call_operand.vmem [shape: f32[1,32], index: 6, kind: input, shape index: {}]   ;;  %s1505_s7 = inlined_call_operand.hbm [shape: f32[3,32,32], index: 7, kind: input, shape index: {}]   ;;  %s1506_s8 = inlined_call_operand.vmem [shape: f32[1,32], index: 8, kind: input, shape index: {}]   ;;  %s1507_s9 = inlined_call_operand.hbm [shape: f32[4,1,32], index: 9, kind: output, shape index: {}]  }
   0x1   :  { %1508 = sst [smem:[#allocation13_spill]] %s1501_s3 }
   0x2   :  { %1509 = sst [smem:[#allocation14_spill]] %s1503_s5 }
   0x3   :  { %14 = vsyncpa [#allocation3], 0 }
   0x4   :  { %15 = vsyncpa [#allocation6], 0 }
   0x5   :  { %16 = vsyncpa [#allocation4], 0 }
   0x6   :  { %18 = vsyncpa [#allocation4 + $0x1], 0  ;;  %s1269_s30 = smov 0   ;;  %s1271_s10 = smov 0  }
   0x7   :  { %s1273_s11 = smov 0   ;;  %s1275_s12 = smov 0  }
   0x8 LB: > { %s1290_s13 = sadd.s32 4294967295, %s1209_s12   ;;  %s924_s14 = sadd.s32 4294967294, %s1209_s12   ;;  %s1209_s12 = sphi %s1275_s12, %s1521_s12   ;;  %s1205_s11 = sphi %s1273_s11, %s1520_s11   ;;  %s1201_s10 = sphi %s1271_s10, %s1519_s10   ;;  %s1197_s30 = sphi %s1269_s30, %s1518_s30  }
   0x9   : > { %s1294_s15 = sadd.s32 1, %s1209_s12   ;;  %s225_s16 = sadd.s32 1, %s1205_s11 }
   0xa   : > { %s222_s17 = ssub.s32 %s1209_s12, %s1294_s15  ;;  %p235_p0 = scmp.ne.s32.totalorder %s1205_s11, %s1201_s10 }
   0xb   : > { %p223_p1 = scmp.eq.s32.totalorder %s222_s17, 0  ;;  %p236_p2 = scmp.eq.s32.totalorder %s1290_s13, 3 }
   0xc   : > { %p241_p3 = scmp.ne.s32.totalorder %s1201_s10, %s1197_s30  ;;  %p242_p4 = scmp.eq.s32.totalorder %s924_s14, 3 }
   0xd   : > { %s1305_s18 = scalar_select %p223_p1, %s1205_s11, %s225_s16  }
   0xe   : > { %p1307_p5 = por %p236_p2, %p235_p0  ;;  %p1311_p6 = por %p242_p4, %p241_p3 }
   0xf   : > { %1510 = sst [smem:[#allocation12_spill]] %s1305_s18  ;;  %p925_p7 = scmp.ge.s32.totalorder %s1209_s12, 1 }
  0x10   : > { %p249_p8 = scmp.lt.s32.totalorder %s1209_s12, 5  ;;  %p989_p9 = scmp.eq.s32.totalorder %s1290_s13, 0 }
  0x11   : > { %s1514_s5 = sld [smem:[#allocation14_spill]]  ;;  %s1211_s29 = smov [#allocation5]  }
  0x12   : > { %p1318_p10 = pnand %p925_p7, %p249_p8  ;;  %s1515_s3 = sld [smem:[#allocation13_spill]] }
  0x13   : > { %s285_s14 = sshll.u32 %s1211_s29, 4  ;;  %s1212_s16 = smov 128   ;;  %s286_s14 = int_to_ptr.vmem [resolvable:$true] %s285_s14 }
  0x14   : > { %p975_p11 = pneg %p1318_p10  ;;  %s1213_s17 = smov 8  }
  0x15   : > { %s1214_s22 = smov [#allocation2]  }
  0x16   : > { %p1332_p12 = pnand %p989_p9, %p975_p11  ;;  %s268_s23 = sshll.u32 %s1214_s22, 4  ;;  %s269_s23 = int_to_ptr.vmem [resolvable:$true] %s268_s23 }
  0x17   : > { %s283_s24 = sshll.u32 %s1514_s5, 4  ;;  %s1215_s5 = smov [#allocation7]   ;;  %s284_s24 = int_to_ptr.hbm [resolvable:$true] %s283_s24 }
  0x18   : > { %s266_s27 = sshll.u32 %s1515_s3, 4  ;;  %s300_s3 = sshll.u32 %s1505_s7, 4  ;;  %s267_s27 = int_to_ptr.hbm [resolvable:$true] %s266_s27  ;;  %s301_s3 = int_to_ptr.hbm [resolvable:$true] %s300_s3 }
  0x19   : > { %981 = dma.hbm_to_vmem [thread:$0]  (!%p1332_p12), %s284_s24, 1536, %s286_s14, [#allocation6], %s1212_s16, %s1212_s16, %s1213_s17  }
  0x1a   : > { %978 = dma.hbm_to_vmem [thread:$0]  (!%p1332_p12), %s267_s27, 1536, %s269_s23, [#allocation3], %s1212_s16, %s1212_s16, %s1213_s17  }
  0x1b   : > { %s302_s18 = sshll.u32 %s1215_s5, 4  ;;  %329 = sbr.rel (%p1318_p10) target bundleno = 646 (0x286), region = 56  ;;  %s303_s18 = int_to_ptr.vmem [resolvable:$true] %s302_s18 }
  0x1c   : > { %984 = dma.hbm_to_vmem [thread:$0]  (!%p1332_p12), %s301_s3, 1536, %s303_s18, [#allocation6], %s1212_s16, %s1212_s16, %s1213_s17  }
  0x20   : > { %1184 = dma.done.wait (%p989_p9), [#allocation3], 1536  }
  0x21   : > { %1186 = vsyncadd (%p989_p9), [#allocation3], 4294965760 }
  0x22   : > { %1188 = dma.done.wait (%p989_p9), [#allocation6], 3072  }
  0x23   : > { %1190 = vsyncadd (%p989_p9), [#allocation6], 4294964224  ;;  %p375_p13 = scmp.lt.s32.totalorder %s1290_s13, 3  ;;  %v1216_v0 = vmov 0   ;;  %v1217_v1 = vmov 2   ;;  %v1218_v4 = vmov 1   ;;  %v432_v30 = vlaneseq  ;;  %s834_s29 = scalar_lea.hbm %s1507_s9, %s1290_s13 }
  0x24   : > { %1038 = vset.pattern.permute.xlu1 %v1216_v0  ;;  %1036 = vset.pattern.permute.xlu0 %v1216_v0  ;;  %v461_v5 = vld [vmem:[#allocation2 + $0x38] sm:$0xff]  ;;  %v460_v6 = vld [vmem:[#allocation2 + $0x30] sm:$0xff]  ;;  %v459_v8 = vld [vmem:[#allocation2 + $0x28] sm:$0xff]  ;;  %vm462_vm0 = vcmask 261120   ;;  %s838_s17 = sshll.u32 %s834_s29, 4  ;;  %vm823_vm5 = vcmask 253952   ;;  %s839_s17 = int_to_ptr.hbm [resolvable:$true] %s838_s17 }
  0x25   : > { %s376_s3 = scalar_select %p375_p13, %s1290_s13, 3  ;;  %1040 = vset.pattern.permute.xlu2 %v1217_v1  ;;  %481 = vmatpush.msra.mxu0 %v461_v5  ;;  %v525_v7 = vld [vmem:[#allocation2 + $0x58] sm:$0xff]  ;;  %v524_v9 = vld [vmem:[#allocation2 + $0x50] sm:$0xff]  ;;  %v458_v10 = vld [vmem:[#allocation2 + $0x20] sm:$0xff]  ;;  %v1378_v38 = vshrl.u32 %v432_v30, 7 }
  0x26   : > { %957 = vmatpush.msra.mxu1 %v461_v5  ;;  %544 = vmatpush.msra.mxu2 %v525_v7  ;;  %v523_v11 = vld [vmem:[#allocation2 + $0x48] sm:$0xff]  ;;  %v456_v12 = vld [vmem:[#allocation2 + $0x18] sm:$0xff]  ;;  %v455_v13 = vld [vmem:[#allocation2 + $0x10] sm:$0xff]  ;;  %s1153_s23 = sshra.s32 %s839_s17, 4  ;;  %s1154_s23 = int_to_ptr.hbm [resolvable:$true] %s1153_s23 }
  0x27   : > { %s956_s5 = sshll.u32 %s376_s3, 4  ;;  %482 = vmatpush.msra.mxu0 %v460_v6  ;;  %v522_v14 = vld [vmem:[#allocation2 + $0x40] sm:$0xff]  ;;  %v454_v15 = vld [vmem:[#allocation2 + $0x8] sm:$0xff]  ;;  %vm448_vm1 = vcmp.lt.s32.totalorder %v1378_v38, 7  ;;  %vm441_vm2 = vcmp.lt.s32.totalorder %v1378_v38, 1  ;;  %v1398_v48 = vadd.s32 8, %v1378_v38  ;;  %p1160_p3 = scmp.lt.s32.totalorder %s1154_s23, %s1507_s9 }
  0x28   : > { %s379_s24 = scalar_lea.vmem %s1498_s0, %s956_s5  ;;  %958 = vmatpush.msra.mxu1 %v460_v6  ;;  %545 = vmatpush.msra.mxu2 %v524_v9  ;;  %v453_v16 = vld [vmem:[#allocation2] sm:$0xff]  ;;  %vm435_vm3 = vcmp.ne.s32.totalorder %v1378_v38, 0  ;;  %v585_v54 = vld [vmem:[#allocation5 + $0x38] sm:$0xff]  ;;  %v584_v55 = vld [vmem:[#allocation5 + $0x30] sm:$0xff]  ;;  %s1155_s25 = scalar_lea.hbm %s1154_s23, 1 }
  0x29   : > { %v381_v2 = vld [vmem:[%s379_s24 + $0x8] sm:$0xff]  ;;  %v380_v3 = vld [vmem:[%s379_s24] sm:$0xff]  ;;  %483 = vmatpush.msra.mxu0 %v459_v8  ;;  %vm438_vm4 = vcmp.ne.s32.totalorder %v1398_v48, 15  ;;  %604 = vmatpush.msra.mxu3 %v585_v54  ;;  %v648_v58 = vld [vmem:[#allocation5 + $0x58] sm:$0xff]  ;;  %s373_s24 = sand.u32 1, %s1201_s10   ;;  %p1156_p0 = scmp.ne.s32.totalorder %s1154_s23, %s1155_s25 }
  0x2a   : > { %390 = vperm.xlu0 %1036, %v381_v2   ;;  %385 = vperm.xlu1 %1038, %v380_v3   ;;  %v1043_v20 = vld [vmem:[%s1499_s1] ss:$0 sm:$0xff]  ;;  %v1044_v21 = vld [vmem:[%s1499_s1 + $0x1] ss:$0 sm:$0xff]  ;;  %v1042_v22 = vld [vmem:[%s1499_s1 + $0x2] ss:$0 sm:$0xff] }
  0x2b   : > { %416 = vperm.xlu2 %1040, %v381_v2   ;;  %959 = vmatpush.msra.mxu1 %v459_v8  ;;  %v1045_v33 = vld [vmem:[%s1500_s2] ss:$0 sm:$0xff]  ;;  %v583_v56 = vld [vmem:[#allocation5 + $0x28] sm:$0xff]  ;;  %v580_v59 = vld [vmem:[#allocation5 + $0x18] sm:$0xff]  ;;  %s374_s14 = scalar_lea.vmem [#allocation8], %s373_s24  ;;  %s826_s22 = scalar_lea.sflag [#allocation4], %s373_s24 }
  0x2c   : > { %484 = vmatpush.msra.mxu0 %v458_v10  ;;  %546 = vmatpush.msra.mxu2 %v523_v11  ;;  %v582_v57 = vld [vmem:[#allocation5 + $0x20] sm:$0xff]  ;;  %v647_v60 = vld [vmem:[#allocation5 + $0x50] sm:$0xff]  ;;  %v646_v62 = vld [vmem:[#allocation5 + $0x48] sm:$0xff]  ;;  %s836_s16 = sshll.u32 %s374_s14, 4  ;;  %p1157_p1 = pnand %p1156_p0, %p1307_p5  ;;  %s837_s16 = int_to_ptr.vmem [resolvable:$true] %s836_s16 }
  0x2d   : > { %960 = vmatpush.msra.mxu1 %v458_v10  ;;  %605 = vmatpush.msra.mxu3 %v584_v55  ;;  %v579_v61 = vld [vmem:[#allocation5 + $0x10] sm:$0xff]  ;;  %v578_v63 = vld [vmem:[#allocation5 + $0x8] sm:$0xff]  ;;  %v577_v0 = vld [vmem:[#allocation5] sm:$0xff]  ;;  %s1159_s3 = scalar_lea.hbm %s1507_s9, 4 }
  0x2e   : > { %547 = vmatpush.msra.mxu2 %v522_v14  ;;  %633 = vmatpush.msrb.mxu0 %v580_v59  ;;  %v1046_v7 = vld [vmem:[%s1502_s4] ss:$0 sm:$0xff]  ;;  %v709_v30 = vld [vmem:[#allocation7 + $0x30] sm:$0xff]  ;;  %p1158_p2 = pneg %p1157_p1  ;;  %p1161_p4 = scmp.lt.s32.totalorder %s1159_s3, %s1155_s25 }
  0x2f   : > { %510 = vmatpush.msrb.mxu1 %v456_v12  ;;  %606 = vmatpush.msra.mxu3 %v583_v56 }
  0x30   : > { %634 = vmatpush.msrb.mxu0 %v579_v61  ;;  %p1162_p7 = por %p1161_p4, %p1160_p3 }
  0x31   : > { %511 = vmatpush.msrb.mxu1 %v455_v13  ;;  %607 = vmatpush.msra.mxu3 %v582_v57 }
  0x32   : > { %1037 = vset.pattern.permute.xlu0 %v1218_v4  ;;  %1039 = vset.pattern.permute.xlu1 %v1218_v4  ;;  %p1163_p8 = pnand %p1162_p7, %p1158_p2 }
  0x33   : > { %402 = vperm.xlu0 %1037, %v381_v2   ;;  %398 = vperm.xlu1 %1039, %v380_v3  }
  0x34   : > { %412 = vperm.xlu2 %1040, %v380_v3   ;;  %512 = vmatpush.msrb.mxu1 %v454_v15 }
  0x35   : > { %635 = vmatpush.msrb.mxu0 %v578_v63 }
  0x36   : > { %513 = vmatpush.msrb.mxu1 %v453_v16 }
  0x37   : > { %636 = vmatpush.msrb.mxu0 %v577_v0 }
  0x3b   : > { %1041 = vset.pattern.permute.xlu0 %v1217_v1  ;;  %v645_v1 = vld [vmem:[#allocation5 + $0x40] sm:$0xff] }
  0x85   : > { %v417_v17 = vpop.permute.xlu2 %416 }
  0x86   : > { %v421_v31 = vmul.f32 %v1042_v22, %v417_v17 }
  0x8e   : > { %v413_v23 = vpop.permute.xlu2 %412 }
  0x8f   : > { %v420_v32 = vmul.f32 %v1042_v22, %v413_v23 }
  0x9c   : > { %v391_v18 = vpop.permute.xlu0 %390  ;;  %v386_v19 = vpop.permute.xlu1 %385 }
  0x9d   : > { %v395_v26 = vmul.f32 %v1043_v20, %v391_v18  ;;  %v394_v27 = vmul.f32 %v1043_v20, %v386_v19 }
  0xa5   : > { %v1369_v24 = vpop.permute.xlu0 %402  ;;  %v1371_v25 = vpop.permute.xlu1 %398 }
  0xa6   : > { %v407_v28 = vmul.f32 %v1044_v21, %v1369_v24  ;;  %v406_v29 = vmul.f32 %v1044_v21, %v1371_v25 }
  0xa8   : > { %v409_v34 = vadd.f32 %v407_v28, %v395_v26  ;;  %v408_v35 = vadd.f32 %v406_v29, %v394_v27  ;;  %v710_v29 = vld [vmem:[#allocation7 + $0x38] sm:$0xff] }
  0xa9   : > { %729 = vmatpush.msrb.mxu2 %v710_v29 }
  0xaa   : > { %v423_v36 = vadd.f32 %v421_v31, %v409_v34  ;;  %v422_v37 = vadd.f32 %v420_v32, %v408_v35  ;;  %v708_v31 = vld [vmem:[#allocation7 + $0x28] sm:$0xff]  ;;  %v705_v32 = vld [vmem:[#allocation7 + $0x18] sm:$0xff]  ;;  %v704_v34 = vld [vmem:[#allocation7 + $0x10] sm:$0xff] }
  0xab   : > { %730 = vmatpush.msrb.mxu2 %v709_v30  ;;  %758 = vmatpush.msrb.mxu3 %v705_v32  ;;  %v703_v35 = vld [vmem:[#allocation7 + $0x8] sm:$0xff] }
  0xac   : > { %v429_v39 = vadd.f32 %v1045_v33, %v423_v36  ;;  %v428_v40 = vadd.f32 %v1045_v33, %v422_v37  ;;  %v707_v33 = vld [vmem:[#allocation7 + $0x20] sm:$0xff]  ;;  %v773_v36 = vld [vmem:[#allocation7 + $0x58] sm:$0xff]  ;;  %v772_v37 = vld [vmem:[#allocation7 + $0x50] sm:$0xff] }
  0xad   : > { %731 = vmatpush.msrb.mxu2 %v708_v31  ;;  %759 = vmatpush.msrb.mxu3 %v704_v34 }
  0xae   : > { %v1380_v41 = vmax.f32 %v429_v39, 0.0  ;;  %v1382_v42 = vmax.f32 %v428_v40, 0.0  ;;  %v771_v39 = vld [vmem:[#allocation7 + $0x48] sm:$0xff]  ;;  %v702_v40 = vld [vmem:[#allocation7] sm:$0xff] }
  0xaf   : > { %732 = vmatpush.msrb.mxu2 %v707_v33  ;;  %760 = vmatpush.msrb.mxu3 %v703_v35 }
  0xb0   : > { %936 = vmatmul.msk.f32.vlgmr.msra.gmra.mxu0 %vm462_vm0, %v1382_v42  ;;  %937 = vmatmul.msk.f32.vlgmr.msra.gmra.mxu1 %vm462_vm0, %v1380_v41  ;;  %v446_v43 = vrot.slane %v1382_v42, 1  ;;  %v447_v44 = vrot.slane %v1380_v41, 1  ;;  %v439_v45 = vrot.slane %v1382_v42, 7  ;;  %v440_v46 = vrot.slane %v1380_v41, 7 }
  0xb1   : > { %667 = vmatpush.msra.mxu1 %v648_v58  ;;  %792 = vmatpush.msra.mxu0 %v773_v36 }
  0xb2   : > { %v449_v47 = vsel %vm448_vm1, %v446_v43, %v447_v44  ;;  %v443_v49 = vsel %vm441_vm2, %v440_v46, %v439_v45  ;;  %v450_v51 = vsel %vm448_vm1, %v447_v44, %v446_v43  ;;  %v442_v53 = vsel %vm441_vm2, %v439_v45, %v440_v46  ;;  %v770_v43 = vld [vmem:[#allocation7 + $0x40] sm:$0xff]  ;;  %761 = vmatpush.msrb.mxu3 %v702_v40 }
  0xb3   : > { %940 = vmatmul.msk.f32.vlgmr.msra.gmra.mxu2 %vm462_vm0, %v449_v47  ;;  %v444_v50 = vsel %vm435_vm3, %v443_v49, 0.0  ;;  %v452_v52 = vsel %vm438_vm4, %v450_v51, 0.0  ;;  %668 = vmatpush.msra.mxu1 %v647_v60  ;;  %v1047_v49 = vld [vmem:[%s1504_s6] ss:$0 sm:$0xff] }
  0xb4   : > { %793 = vmatpush.msra.mxu0 %v772_v37 }
  0xb5   : > { %669 = vmatpush.msra.mxu1 %v646_v62 }
  0xb6   : > { %794 = vmatpush.msra.mxu0 %v771_v39 }
  0xb7   : > { %670 = vmatpush.msra.mxu1 %v645_v1 }
  0xb8   : > { %938 = vmatmul.msk.f32.vlgmr.msrb.gmra.mxu1 %vm462_vm0, %v444_v50  ;;  %795 = vmatpush.msra.mxu0 %v770_v43 }
  0xbb   : > { %941 = vmatmul.msk.f32.gmra.mxu2 %vm462_vm0, %v452_v52 }
  0xc0   : > { %939 = vmatmul.msk.f32.gmra.mxu1 %vm462_vm0, %v442_v53 }
 0x12d   : > { %v489_v2 = vpop.f32.mrf.mxu1  ;;  %v486_v3 = vpop.f32.mrf.mxu0 }
 0x135   : > { %v515_v4 = vpop.f32.mrf.mxu1 }
 0x136   : > { %v516_v5 = vadd.f32 %v515_v4, %v486_v3  ;;  %v549_v6 = vpop.f32.mrf.mxu2 }
 0x138   : > { %v555_v8 = vadd.f32 %v549_v6, %v516_v5 }
 0x13a   : > { %v561_v9 = vadd.f32 %v1046_v7, %v555_v8 }
 0x13c   : > { %v563_v10 = vmax.f32 %v561_v9, 0.0 }
 0x13d   : > { %v518_v11 = vpop.f32.mrf.mxu1 }
 0x13e   : > { %v519_v12 = vadd.f32 %v518_v11, %v489_v2  ;;  %v552_v13 = vpop.f32.mrf.mxu2  ;;  %942 = vmatmul.msk.f32.vlgmr.msra.gmra.mxu3 %vm462_vm0, %v563_v10  ;;  %v565_v17 = vrot.slane %v563_v10, 7  ;;  %v571_v18 = vrot.slane %v563_v10, 1  ;;  %v1048_v11 = vld [vmem:[%s1506_s8] ss:$0 sm:$0xff] }
 0x140   : > { %v556_v14 = vadd.f32 %v552_v13, %v519_v12 }
 0x142   : > { %v562_v15 = vadd.f32 %v1046_v7, %v556_v14 }
 0x144   : > { %v564_v16 = vmax.f32 %v562_v15, 0.0 }
 0x146   : > { %v566_v19 = vrot.slane %v564_v16, 7  ;;  %v572_v20 = vrot.slane %v564_v16, 1  ;;  %943 = vmatmul.msk.f32.gmra.mxu3 %vm462_vm0, %v564_v16 }
 0x148   : > { %v573_v21 = vsel %vm448_vm1, %v571_v18, %v572_v20  ;;  %v568_v22 = vsel %vm441_vm2, %v566_v19, %v565_v17  ;;  %v574_v26 = vsel %vm448_vm1, %v572_v20, %v571_v18  ;;  %v567_v28 = vsel %vm441_vm2, %v565_v17, %v566_v19 }
 0x149   : > { %946 = vmatmul.msk.f32.vlgmr.msra.gmra.mxu1 %vm462_vm0, %v573_v21  ;;  %v569_v23 = vsel %vm435_vm3, %v568_v22, 0.0  ;;  %v576_v27 = vsel %vm438_vm4, %v574_v26, 0.0 }
 0x14a   : > { %944 = vmatmul.msk.f32.vlgmr.msrb.gmra.mxu0 %vm462_vm0, %v569_v23 }
 0x151   : > { %947 = vmatmul.msk.f32.gmra.mxu1 %vm462_vm0, %v576_v27 }
 0x152   : > { %945 = vmatmul.msk.f32.gmra.mxu0 %vm462_vm0, %v567_v28 }
 0x1c1   : > { %v609_v44 = vpop.f32.mrf.mxu3 }
 0x1c6   : > { %v672_v45 = vpop.f32.mrf.mxu1 }
 0x1c7   : > { %v638_v46 = vpop.f32.mrf.mxu0 }
 0x1c8   : > { %v639_v47 = vadd.f32 %v638_v46, %v609_v44 }
 0x1c9   : > { %v612_v53 = vpop.f32.mrf.mxu3 }
 0x1ca   : > { %v678_v50 = vadd.f32 %v672_v45, %v639_v47 }
 0x1cc   : > { %v684_v51 = vadd.f32 %v1047_v49, %v678_v50 }
 0x1ce   : > { %v686_v52 = vadd.f32 %v684_v51, %v1382_v42  ;;  %v675_v57 = vpop.f32.mrf.mxu1 }
 0x1cf   : > { %v641_v54 = vpop.f32.mrf.mxu0 }
 0x1d0   : > { %v688_v55 = vmax.f32 %v686_v52, 0.0  ;;  %v642_v56 = vadd.f32 %v641_v54, %v612_v53 }
 0x1d2   : > { %v679_v58 = vadd.f32 %v675_v57, %v642_v56  ;;  %948 = vmatmul.msk.f32.vlgmr.msrb.gmra.mxu2 %vm462_vm0, %v688_v55  ;;  %v696_v0 = vrot.slane %v688_v55, 1  ;;  %v690_v1 = vrot.slane %v688_v55, 7 }
 0x1d4   : > { %v685_v59 = vadd.f32 %v1047_v49, %v679_v58 }
 0x1d6   : > { %v687_v60 = vadd.f32 %v685_v59, %v1380_v41 }
 0x1d8   : > { %v689_v61 = vmax.f32 %v687_v60, 0.0 }
 0x1da   : > { %v691_v62 = vrot.slane %v689_v61, 7  ;;  %v697_v63 = vrot.slane %v689_v61, 1  ;;  %949 = vmatmul.msk.f32.gmra.mxu2 %vm462_vm0, %v689_v61 }
 0x1dc   : > { %v698_v42 = vsel %vm448_vm1, %v696_v0, %v697_v63  ;;  %v693_v2 = vsel %vm441_vm2, %v691_v62, %v690_v1  ;;  %v699_v41 = vsel %vm448_vm1, %v697_v63, %v696_v0  ;;  %v692_v5 = vsel %vm441_vm2, %v690_v1, %v691_v62 }
 0x1dd   : > { %952 = vmatmul.msk.f32.vlgmr.msra.gmra.mxu0 %vm462_vm0, %v698_v42  ;;  %v694_v3 = vsel %vm435_vm3, %v693_v2, 0.0  ;;  %v701_v4 = vsel %vm438_vm4, %v699_v41, 0.0 }
 0x1de   : > { %950 = vmatmul.msk.f32.vlgmr.msrb.gmra.mxu3 %vm462_vm0, %v694_v3 }
 0x1e5   : > { %953 = vmatmul.msk.f32.gmra.mxu0 %vm462_vm0, %v701_v4 }
 0x1e6   : > { %951 = vmatmul.msk.f32.gmra.mxu3 %vm462_vm0, %v692_v5 }
 0x255   : > { %v734_v6 = vpop.f32.mrf.mxu2 }
 0x25a   : > { %v797_v7 = vpop.f32.mrf.mxu0 }
 0x25d   : > { %v737_v12 = vpop.f32.mrf.mxu2 }
 0x261   : > { %v763_v8 = vpop.f32.mrf.mxu3 }
 0x262   : > { %v764_v9 = vadd.f32 %v763_v8, %v734_v6  ;;  %v800_v15 = vpop.f32.mrf.mxu0 }
 0x264   : > { %v803_v10 = vadd.f32 %v797_v7, %v764_v9 }
 0x266   : > { %v809_v13 = vadd.f32 %v1048_v11, %v803_v10 }
 0x268   : > { %v811_v16 = vadd.f32 %v809_v13, %v1371_v25 }
 0x269   : > { %v766_v48 = vpop.f32.mrf.mxu3 }
 0x26a   : > { %v767_v14 = vadd.f32 %v766_v48, %v737_v12  ;;  %v813_v19 = vsel %vm462_vm0, %v811_v16, 0.0 }
 0x26c   : > { %v804_v38 = vadd.f32 %v800_v15, %v767_v14 }
 0x26e   : > { %v810_v17 = vadd.f32 %v1048_v11, %v804_v38 }
 0x270   : > { %v812_v18 = vadd.f32 %v810_v17, %v1369_v24 }
 0x272   : > { %v814_v20 = vsel %vm462_vm0, %v812_v18, 0.0 }
 0x273   : > { %v815_v21 = vadd.f32 %v814_v20, %v813_v19 }
 0x275   : > { %v816_v22 = vrot.slane %v815_v21, 4 }
 0x277   : > { %v817_v23 = vadd.f32 %v816_v22, %v815_v21 }
 0x279   : > { %v818_v26 = vrot.slane %v817_v23, 2 }
 0x27b   : > { %v819_v27 = vadd.f32 %v818_v26, %v817_v23 }
 0x27d   : > { %v820_v28 = vrot.slane %v819_v27, 1 }
 0x27f   : > { %v821_v24 = vadd.f32 %v820_v28, %v819_v27 }
 0x281   : > { %v822_v25 = vmul.f32 0.0625, %v821_v24 }
 0x283   : > { %824 = vst.msk [vmem:[%s374_s14] sm:$0x1] %vm823_vm5, %v822_v25 }
 0x284   : > { %1166 = shalt.err (!%p1163_p8)
}
 0x285   : > { %973 = dma.vmem_to_hbm [thread:$0]  (%p1307_p5), %s837_s16, 16, %s839_s17, %s826_s22  }
 0x286 PF: > { %p995_p9 = scmp.ge.s32.totalorder %s1209_s12, 2  ;;  %s850_s21 = sand.u32 1, %s1197_s30  }
 0x287   : > { %s851_s24 = scalar_lea.sflag [#allocation4], %s850_s21 }
 0x288   : > { %p986_p10 = pnand %p995_p9, %p1311_p6 }
 0x28a   : > { %p987_p11 = pneg %p986_p10 }
 0x28c   : > { %1192 = dma.done.wait (%p987_p11), %s851_s24, 16  }
 0x28d   : > { %1194 = vsyncadd (%p987_p11), %s851_s24, 4294967280  ;;  %s1517_s27 = sld [smem:[#allocation12_spill]]  ;;  %p21_p12 = scmp.ge.s32.totalorder %s1294_s15, 6  }
 0x28e   : > { %s1518_s30 = smov %s1201_s10  ;;  %s1519_s10 = smov %s1205_s11 }
 0x28f   : > { %s1521_s12 = smov %s1294_s15  ;;  %23 = sbr.rel (!%p21_p12) target bundleno = 8 (0x8), region = 110 }
 0x293   : > { %s1520_s11 = smov %s1517_s27 }
 0x294   :  { %856 = vsyncpa [#allocation3], 1 }
 0x295   :  { %858 = vsyncpa [#allocation3 + $0x1], 1 }
 0x296   :  { %859 = vsyncpa [#allocation6], 1 }
 0x297   :  { %860 = vsyncpa [#allocation4], 1 }
 0x298   :  { %862 = vsyncpa [#allocation4 + $0x1], 1 }

</bundles_post_ra>
